<compile_context>
chip_gen: v7x
topology: tpu7x:2x2x1
jax: 0.10.0
libtpu: 0.0.40
codegen_flags: <defaults>
</compile_context>

<pallas_src>
import functools

import jax
import jax.numpy as jnp
from jax.experimental import pallas as pl
from jax.experimental.pallas import tpu as pltpu


def fn_net_kernel(x_ref, w0_ref, b0_ref, w1_ref, b1_ref, w2_ref, b2_ref, o_ref):
    # Whole hot path (3 matmuls + bias adds + 2 tanh) fused on one VMEM-resident
    # batch tile; weights stay resident across grid steps (constant index maps).
    x = x_ref[...]
    h = jnp.tanh(
        jnp.dot(x, w0_ref[...], preferred_element_type=jnp.float32) + b0_ref[...]
    )
    h = jnp.tanh(
        jnp.dot(h.astype(w1_ref.dtype), w1_ref[...],
                preferred_element_type=jnp.float32) + b1_ref[...]
    )
    o_ref[...] = (
        jnp.dot(h.astype(w2_ref.dtype), w2_ref[...],
                preferred_element_type=jnp.float32) + b2_ref[...]
    ).astype(o_ref.dtype)


def _round_up(n, m):
    return ((n + m - 1) // m) * m


@functools.partial(jax.jit, static_argnames=("batch_tile", "matmul_dtype"))
def fn_net_forward(x, params, *, batch_tile=512, matmul_dtype=None):
    """x: [B, input_dim] float32. params: dict with w0,b0,w1,b1,w2,b2.

    batch_tile:   target rows per grid step (rounded to a sublane multiple).
    matmul_dtype: optional (e.g. jnp.bfloat16) dtype for matmul *operands*;
                  accumulation, biases and tanh stay in float32.
    """
    w0, b0, w1, b1, w2, b2 = (
        params["w0"], params["b0"], params["w1"],
        params["b1"], params["w2"], params["b2"],
    )
    B, D_in = x.shape
    H = w0.shape[1]
    D_out = w2.shape[1]

    # Optional low-precision matmul operands (biases stay f32 for exact bias add).
    if matmul_dtype is not None:
        x = x.astype(matmul_dtype)
        w0 = w0.astype(matmul_dtype)
        w1 = w1.astype(matmul_dtype)
        w2 = w2.astype(matmul_dtype)

    # Sublane-aligned batch tile + zero-padding so any B / batch_tile works.
    sublane = 16 if x.dtype == jnp.bfloat16 else 8
    tile = _round_up(max(1, min(batch_tile, B)), sublane)
    B_pad = _round_up(B, tile)
    if B_pad != B:
        x = jnp.pad(x, ((0, B_pad - B), (0, 0)))
    grid = (B_pad // tile,)

    # Weights / biases replicated to every grid step; only batch axis is tiled.
    in_specs = [
        pl.BlockSpec((tile, D_in), lambda i: (i, 0)),   # x
        pl.BlockSpec((D_in, H), lambda i: (0, 0)),      # w0
        pl.BlockSpec((1, H), lambda i: (0, 0)),         # b0
        pl.BlockSpec((H, H), lambda i: (0, 0)),         # w1
        pl.BlockSpec((1, H), lambda i: (0, 0)),         # b1
        pl.BlockSpec((H, D_out), lambda i: (0, 0)),     # w2
        pl.BlockSpec((1, D_out), lambda i: (0, 0)),     # b2
    ]
    out_spec = pl.BlockSpec((tile, D_out), lambda i: (i, 0))
    # TODO(synk): for very large B / tiny D_out, a lane-dense (padded-to-128) output
    # slab would avoid masked vst.msk stores; not worth it at these sizes.

    # Explicit VMEM budget: resident weights + double-buffered x/out tiles +
    # f32 intermediates, with slack. Clamped well under v7x's 64 MiB physical VMEM.
    def nbytes(a):
        return int(a.size) * a.dtype.itemsize

    weight_bytes = sum(nbytes(a) for a in (w0, b0, w1, b1, w2, b2))
    io_bytes = 2 * tile * (D_in * x.dtype.itemsize + D_out * 4)   # 2x = double buffer
    interm_bytes = 4 * tile * H * 4                               # f32 hidden activations
    vmem_limit = weight_bytes + io_bytes + interm_bytes + (8 << 20)
    vmem_limit = int(min(max(vmem_limit, 16 << 20), 96 << 20))

    cost = pl.CostEstimate(
        flops=2 * B_pad * (D_in * H + H * H + H * D_out),
        transcendentals=2 * B_pad * H,
        bytes_accessed=nbytes(x) + weight_bytes + B_pad * D_out * 4,
    )

    out = pl.pallas_call(
        fn_net_kernel,
        out_shape=jax.ShapeDtypeStruct((B_pad, D_out), jnp.float32),
        grid_spec=pltpu.PrefetchScalarGridSpec(
            num_scalar_prefetch=0,
            grid=grid,
            in_specs=in_specs,
            out_specs=out_spec,
        ),
        compiler_params=pltpu.CompilerParams(
            dimension_semantics=("parallel",),   # shards batch tiles across v7x's 2 TCs
            vmem_limit_bytes=vmem_limit,
        ),
        cost_estimate=cost,
    )(x, w0, b0, w1, b1, w2, b2)

    return out[:B] if B_pad != B else out


def init_params(key, input_dim, output_dim, hid_size):
    """Deterministic init mimicking nn.Linear's U(-1/sqrt(fan_in), 1/sqrt(fan_in))."""
    ks = jax.random.split(key, 6)

    def lin(kw, kb, fan_in, fan_out):
        bound = 1.0 / jnp.sqrt(jnp.float32(fan_in))
        w = jax.random.uniform(kw, (fan_in, fan_out), jnp.float32, -bound, bound)
        b = jax.random.uniform(kb, (1, fan_out), jnp.float32, -bound, bound)
        return w, b

    w0, b0 = lin(ks[0], ks[1], input_dim, hid_size)
    w1, b1 = lin(ks[2], ks[3], hid_size, hid_size)
    w2, b2 = lin(ks[4], ks[5], hid_size, output_dim)
    return {"w0": w0, "b0": b0, "w1": w1, "b1": b1, "w2": w2, "b2": b2}


def fn_net_reference(x, p):
    h = jnp.tanh(x @ p["w0"] + p["b0"])
    h = jnp.tanh(h @ p["w1"] + p["b1"])
    return h @ p["w2"] + p["b2"]


if __name__ == "__main__":
    key = jax.random.PRNGKey(0)
    k_x, k_x2, k_p = jax.random.split(key, 3)

    input_dim, output_dim, hid_size = 4, 2, 32
    params = init_params(k_p, input_dim, output_dim, hid_size)

    # --- Test 1: small batch, f32 path (tight tolerance) ---
    batch = 8
    x = jax.random.normal(k_x, (batch, input_dim), jnp.float32)
    out = jax.block_until_ready(fn_net_forward(x, params))
    ref = fn_net_reference(x, params)
    assert out.shape == (batch, output_dim)
    assert jnp.allclose(out, ref, atol=1e-5, rtol=1e-5)

    # --- Test 2: ragged batch (not a multiple of tile or 8), f32 path ---
    big_batch = 1000
    x2 = jax.random.normal(k_x2, (big_batch, input_dim), jnp.float32)
    out2 = jax.block_until_ready(fn_net_forward(x2, params, batch_tile=256))
    ref2 = fn_net_reference(x2, params)
    assert out2.shape == (big_batch, output_dim)
    assert jnp.allclose(out2, ref2, atol=1e-5, rtol=1e-5)

    # --- Test 3: bf16 matmul operands (f32 accumulation), looser tolerance ---
    out3 = jax.block_until_ready(
        fn_net_forward(x2, params, batch_tile=256, matmul_dtype=jnp.bfloat16)
    )
    assert out3.shape == (big_batch, output_dim)
    assert jnp.allclose(out3, ref2, atol=5e-2, rtol=5e-2)

    print("KERNEL_OK")
</pallas_src>

<mosaic_0001>
module attributes {stable_mosaic.version = 11 : i64} {
  func.func @fn_net_kernel(%arg0: i32, %arg1: memref<8x4xf32, #tpu.memory_space<vmem>>, %arg2: memref<4x32xf32, #tpu.memory_space<vmem>>, %arg3: memref<1x32xf32, #tpu.memory_space<vmem>>, %arg4: memref<32x32xf32, #tpu.memory_space<vmem>>, %arg5: memref<1x32xf32, #tpu.memory_space<vmem>>, %arg6: memref<32x2xf32, #tpu.memory_space<vmem>>, %arg7: memref<1x2xf32, #tpu.memory_space<vmem>>, %arg8: memref<8x2xf32, #tpu.memory_space<vmem>>) attributes {dimension_semantics = [#tpu.dimension_semantics<parallel>], iteration_bounds = array<i64: 1>, scalar_prefetch = 0 : i64, scratch_operands = 0 : i64, tpu.core_type = #tpu.core_type<tc>, window_params = [{transform_indices = @transform_0, window_bounds = array<i64: 8, 4>}, {pipeline_mode = #tpu.pipeline_mode<synchronous>, transform_indices = @transform_1, window_bounds = array<i64: 4, 32>}, {pipeline_mode = #tpu.pipeline_mode<synchronous>, transform_indices = @transform_2, window_bounds = array<i64: 1, 32>}, {pipeline_mode = #tpu.pipeline_mode<synchronous>, transform_indices = @transform_3, window_bounds = array<i64: 32, 32>}, {pipeline_mode = #tpu.pipeline_mode<synchronous>, transform_indices = @transform_4, window_bounds = array<i64: 1, 32>}, {pipeline_mode = #tpu.pipeline_mode<synchronous>, transform_indices = @transform_5, window_bounds = array<i64: 32, 2>}, {pipeline_mode = #tpu.pipeline_mode<synchronous>, transform_indices = @transform_6, window_bounds = array<i64: 1, 2>}, {transform_indices = @transform_7, window_bounds = array<i64: 8, 2>}]} {
    %c0 = arith.constant 0 : index
    %c0_0 = arith.constant 0 : index
    %0 = vector.load %arg1[%c0, %c0_0] : memref<8x4xf32, #tpu.memory_space<vmem>>, vector<8x4xf32>
    %c0_1 = arith.constant 0 : index
    %c0_2 = arith.constant 0 : index
    %1 = vector.load %arg2[%c0_1, %c0_2] : memref<4x32xf32, #tpu.memory_space<vmem>>, vector<4x32xf32>
    %cst = arith.constant dense<0.000000e+00> : vector<8x32xf32>
    %2 = tpu.matmul %0, %1, %cst {dimension_numbers = #tpu.dot_dimension_numbers<[1], [0], [0], [1], [0, 0, 1, 1], [], []>} : vector<8x4xf32>, vector<4x32xf32>, vector<8x32xf32> -> vector<8x32xf32>
    %c0_3 = arith.constant 0 : index
    %c0_4 = arith.constant 0 : index
    %3 = vector.load %arg3[%c0_3, %c0_4] : memref<1x32xf32, #tpu.memory_space<vmem>>, vector<1x32xf32>
    %4 = vector.broadcast %3 : vector<1x32xf32> to vector<8x32xf32>
    %5 = arith.addf %2, %4 : vector<8x32xf32>
    %6 = math.tanh %5 : vector<8x32xf32>
    %c0_5 = arith.constant 0 : index
    %c0_6 = arith.constant 0 : index
    %7 = vector.load %arg4[%c0_5, %c0_6] : memref<32x32xf32, #tpu.memory_space<vmem>>, vector<32x32xf32>
    %cst_7 = arith.constant dense<0.000000e+00> : vector<8x32xf32>
    %8 = tpu.matmul %6, %7, %cst_7 {dimension_numbers = #tpu.dot_dimension_numbers<[1], [0], [0], [1], [0, 0, 1, 1], [], []>} : vector<8x32xf32>, vector<32x32xf32>, vector<8x32xf32> -> vector<8x32xf32>
    %c0_8 = arith.constant 0 : index
    %c0_9 = arith.constant 0 : index
    %9 = vector.load %arg5[%c0_8, %c0_9] : memref<1x32xf32, #tpu.memory_space<vmem>>, vector<1x32xf32>
    %10 = vector.broadcast %9 : vector<1x32xf32> to vector<8x32xf32>
    %11 = arith.addf %8, %10 : vector<8x32xf32>
    %12 = math.tanh %11 : vector<8x32xf32>
    %c0_10 = arith.constant 0 : index
    %c0_11 = arith.constant 0 : index
    %13 = vector.load %arg6[%c0_10, %c0_11] : memref<32x2xf32, #tpu.memory_space<vmem>>, vector<32x2xf32>
    %cst_12 = arith.constant dense<0.000000e+00> : vector<8x2xf32>
    %14 = tpu.matmul %12, %13, %cst_12 {dimension_numbers = #tpu.dot_dimension_numbers<[1], [0], [0], [1], [0, 0, 1, 1], [], []>} : vector<8x32xf32>, vector<32x2xf32>, vector<8x2xf32> -> vector<8x2xf32>
    %c0_13 = arith.constant 0 : index
    %c0_14 = arith.constant 0 : index
    %15 = vector.load %arg7[%c0_13, %c0_14] : memref<1x2xf32, #tpu.memory_space<vmem>>, vector<1x2xf32>
    %16 = vector.broadcast %15 : vector<1x2xf32> to vector<8x2xf32>
    %17 = arith.addf %14, %16 : vector<8x2xf32>
    %c0_15 = arith.constant 0 : index
    %c0_16 = arith.constant 0 : index
    %18 = vector.load %arg8[%c0_15, %c0_16] : memref<8x2xf32, #tpu.memory_space<vmem>>, vector<8x2xf32>
    tpu.vector_store %arg8[%c0_15, %c0_16], %17 {strides = array<i32>} : memref<8x2xf32, #tpu.memory_space<vmem>>, vector<8x2xf32>,
    return
  }
  func.func @transform_0(%arg0: i32) -> (i32, i32) {
    %c0_i32 = arith.constant 0 : i32
    %c0_i32_0 = arith.constant 0 : i32
    return %arg0, %c0_i32 : i32, i32
  }
  func.func @transform_1(%arg0: i32) -> (i32, i32) {
    %c0_i32 = arith.constant 0 : i32
    %c0_i32_0 = arith.constant 0 : i32
    %c0_i32_1 = arith.constant 0 : i32
    return %c0_i32, %c0_i32_0 : i32, i32
  }
  func.func @transform_2(%arg0: i32) -> (i32, i32) {
    %c0_i32 = arith.constant 0 : i32
    %c0_i32_0 = arith.constant 0 : i32
    %c0_i32_1 = arith.constant 0 : i32
    return %c0_i32, %c0_i32_0 : i32, i32
  }
  func.func @transform_3(%arg0: i32) -> (i32, i32) {
    %c0_i32 = arith.constant 0 : i32
    %c0_i32_0 = arith.constant 0 : i32
    %c0_i32_1 = arith.constant 0 : i32
    return %c0_i32, %c0_i32_0 : i32, i32
  }
  func.func @transform_4(%arg0: i32) -> (i32, i32) {
    %c0_i32 = arith.constant 0 : i32
    %c0_i32_0 = arith.constant 0 : i32
    %c0_i32_1 = arith.constant 0 : i32
    return %c0_i32, %c0_i32_0 : i32, i32
  }
  func.func @transform_5(%arg0: i32) -> (i32, i32) {
    %c0_i32 = arith.constant 0 : i32
    %c0_i32_0 = arith.constant 0 : i32
    %c0_i32_1 = arith.constant 0 : i32
    return %c0_i32, %c0_i32_0 : i32, i32
  }
  func.func @transform_6(%arg0: i32) -> (i32, i32) {
    %c0_i32 = arith.constant 0 : i32
    %c0_i32_0 = arith.constant 0 : i32
    %c0_i32_1 = arith.constant 0 : i32
    return %c0_i32, %c0_i32_0 : i32, i32
  }
  func.func @transform_7(%arg0: i32) -> (i32, i32) {
    %c0_i32 = arith.constant 0 : i32
    %c0_i32_0 = arith.constant 0 : i32
    return %arg0, %c0_i32 : i32, i32
  }
}

</mosaic_0001>

<bundles_post_ra>
// kernel: fn_net_forward.1
= control target key start
LH: loop header
LB: loop body
LE: loop exit
PB: predicated region body
PF: predicated region fallthrough
CT: control target
= control target key end

     0   :  { %vm39_vm0 = vcmask 1043456   ;;  %vm35_vm1 = vcmask 31744   ;;  %v355_v0 = vmov 0.0   ;;  %vm356_vm2 = vmmov 0   ;;  %s442_s1 = inlined_call_operand.vmem [shape: f32[4,32], index: 1, kind: input, shape index: {}]   ;;  %s443_s0 = inlined_call_operand.vmem [shape: f32[8,4], index: 0, kind: input, shape index: {}]   ;;  %s444_s3 = inlined_call_operand.vmem [shape: f32[32,32], index: 3, kind: input, shape index: {}]   ;;  %s445_s2 = inlined_call_operand.vmem [shape: f32[1,32], index: 2, kind: input, shape index: {}]   ;;  %s446_s5 = inlined_call_operand.vmem [shape: f32[32,2], index: 5, kind: input, shape index: {}]   ;;  %s447_s4 = inlined_call_operand.vmem [shape: f32[1,32], index: 4, kind: input, shape index: {}]   ;;  %s448_s6 = inlined_call_operand.vmem [shape: f32[1,2], index: 6, kind: input, shape index: {}]   ;;  %s449_s7 = inlined_call_operand.vmem [shape: f32[8,2], index: 7, kind: output, shape index: {}]  }
   0x1   :  { %309 = vmatprep.subr.mxu0 %v355_v0  ;;  %v27_v1 = vld [vmem:[%s442_s1] sm:$0xf]  ;;  %311 = vmatprep.mubr.msk.f32.mxu0 %vm356_vm2, %v355_v0  ;;  %v357_v3 = vmov 0.0|0.0   ;;  %v115_v5 = vld [vmem:[%s444_s3 + $0x8] sm:$0xff]  ;;  %v116_v6 = vld [vmem:[%s444_s3 + $0x10] sm:$0xff]  ;;  %vm125_vm3 = vcmask 261120  }
   0x2   :  { %v26_v2 = vld [vmem:[%s443_s0] sm:$0xff]  ;;  %310 = vmatpush3.msk.msra.mxu0 %vm39_vm0, %v27_v1  ;;  %322 = vmatprep.mubr.msk.f32.mxu1 %vm356_vm2, %v355_v0  ;;  %v117_v8 = vld [vmem:[%s444_s3 + $0x18] sm:$0xff]  ;;  %v201_v16 = vld [vmem:[%s446_s5 + $0x8] sm:$0xff]  ;;  %vm284_vm4 = vcmask 15360  }
   0x3   :  { %312 = vmatmul.mubr.msk.f32.vlgmr.msra.gmra.mrb[0].mxu0 %vm35_vm1, %v26_v2  ;;  %336 = vmatprep.subr.bf16.mxu1 %v357_v3  ;;  %v114_v4 = vld [vmem:[%s444_s3] sm:$0xff]  ;;  %v340_v9 = vpack.c.bf16 %v117_v8, %v116_v6  ;;  %v202_v17 = vld [vmem:[%s446_s5 + $0x10] sm:$0xff]  ;;  %v203_v19 = vld [vmem:[%s446_s5 + $0x18] sm:$0xff] }
   0x4   :  { %333 = vmatprep.mubr.msk.f32.mxu0 %vm356_vm2, %v355_v0  ;;  %342 = vmatprep.subr.bf16.mxu0 %v357_v3  ;;  %v337_v7 = vpack.c.bf16 %v115_v5, %v114_v4  ;;  %v290_v10 = vld [vmem:[%s445_s2] ss:$0 sm:$0xff]  ;;  %v346_v20 = vpack.c.bf16 %v203_v19, %v202_v17 }
   0x5   :  { %v200_v15 = vld [vmem:[%s446_s5] sm:$0xff] }
   0x6   :  { %338 = vmatpush3.bf16.msra.mxu1 %v337_v7  ;;  %v343_v18 = vpack.c.bf16 %v201_v16, %v200_v15  ;;  %v293_v21 = vld [vmem:[%s447_s4] ss:$0 sm:$0xff] }
   0x7   :  { %339 = vmatprep.subr.bf16.mxu1 %v357_v3  ;;  %v295_v26 = vld [vmem:[%s448_s6] ss:$0 sm:$0xff] }
   0x8   :  { %344 = vmatpush3.bf16.msra.mxu0 %v343_v18 }
   0x9   :  { %345 = vmatprep.subr.bf16.mxu0 %v357_v3 }
   0xa   :  { %341 = vmatpush3.bf16.msra.mxu1 %v340_v9 }
   0xc   :  { %347 = vmatpush3.bf16.msra.mxu0 %v346_v20 }
  0xd6   :  { %v109_v11 = vpop.f32.mrb[0].mxu0 }
  0xd7   :  { %v110_v12 = vadd.f32 %v290_v10, %v109_v11  ;;  %v313_v13 = vpop.f32.mrb[1].mxu0 }
  0xd9   :  { %351 = vtanh.f32 %v110_v12 }
  0xe3   :  { %v352_v14 = vpop.eup %351 }
  0xe4   :  { %323 = vmatmul.mubr.msk.f32.vlgmr.msra.gmra.mrb[0].mxu1 %vm125_vm3, %v352_v14 }
 0x1b7   :  { %v195_v22 = vpop.f32.mrb[0].mxu1 }
 0x1b8   :  { %v196_v23 = vadd.f32 %v293_v21, %v195_v22  ;;  %v324_v24 = vpop.f32.mrb[1].mxu1 }
 0x1ba   :  { %353 = vtanh.f32 %v196_v23 }
 0x1c4   :  { %v354_v25 = vpop.eup %353 }
 0x1c5   :  { %334 = vmatmul.mubr.msk.f32.vlgmr.msra.gmra.mrb[2].mxu0 %vm125_vm3, %v354_v25 }
 0x298   :  { %v280_v27 = vpop.f32.mrb[2].mxu0 }
 0x299   :  { %v281_v28 = vadd.f32 %v295_v26, %v280_v27  ;;  %v335_v29 = vpop.f32.mrb[3].mxu0 }
 0x29b   :  { %285 = vst.msk [vmem:[%s449_s7] sm:$0xff] %vm284_vm4, %v281_v28 }

</bundles_post_ra>
